<compile_context>
chip_gen: v6e
topology: v6e:2x2x1
jax: 0.10.0
libtpu: 0.0.40
codegen_flags: <defaults>
</compile_context>

<pallas_src>
import numpy as np

import jax
import jax.numpy as jnp
from jax.experimental import pallas as pl
from jax.experimental.pallas import tpu as pltpu


def _round_up(x, m):
    return ((x + m - 1) // m) * m


# ----------------------------------------------------------------------------- kernels
def _stft_kernel_single(dft_ref, frames_ref, out_ref):
    """Whole contraction in one MXU matmul (DFT matrix fully resident in VMEM).

    dft_ref:    (F2, n_fft)    window-folded [Re ; Im] DFT matrix (DMA'd once)
    frames_ref: (1, n_fft, tf) frames, time-major (K on sublanes, frames on lanes)
    out_ref:    (1, F2, tf)
    """
    out_ref[0] = jnp.dot(dft_ref[...], frames_ref[0],
                         preferred_element_type=jnp.float32).astype(out_ref.dtype)


def _stft_kernel_ktiled(dft_ref, frames_ref, out_ref):
    """K-tiled variant for very large n_fft.

    The output block index is independent of k (innermost grid axis), so the block
    stays resident across k: zero it at k==0 and accumulate straight into it.
    """
    k = pl.program_id(2)

    @pl.when(k == 0)
    def _():
        out_ref[...] = jnp.zeros_like(out_ref)

    out_ref[0] += jnp.dot(dft_ref[...], frames_ref[0],
                          preferred_element_type=jnp.float32)


# --------------------------------------------------------------------------- pallas_call
def stft_pallas(dftT, frames_t, *, tf, tk, vmem_limit_bytes):
    """dftT: (F2, n_fft), frames_t: (B, n_fft, n_frames_p) -> (B, F2, n_frames_p) f32."""
    B, n_fft, n_frames_p = frames_t.shape
    F2 = dftT.shape[0]
    assert n_frames_p % tf == 0 and n_fft % tk == 0
    nj = n_frames_p // tf
    nk = n_fft // tk

    if nk == 1:
        # Constant DFT index map -> the matrix is DMA'd from HBM exactly once.
        grid = (B, nj)
        in_specs = [pl.BlockSpec((F2, n_fft), lambda b, j: (0, 0)),
                    pl.BlockSpec((1, n_fft, tf), lambda b, j: (b, 0, j))]
        out_specs = pl.BlockSpec((1, F2, tf), lambda b, j: (b, 0, j))
        kernel = _stft_kernel_single
        semantics = ("parallel", "parallel")
    else:
        grid = (B, nj, nk)
        in_specs = [pl.BlockSpec((F2, tk), lambda b, j, k: (0, k)),
                    pl.BlockSpec((1, tk, tf), lambda b, j, k: (b, k, j))]
        out_specs = pl.BlockSpec((1, F2, tf), lambda b, j, k: (b, 0, j))
        kernel = _stft_kernel_ktiled
        semantics = ("parallel", "parallel", "arbitrary")

    return pl.pallas_call(
        kernel,
        out_shape=jax.ShapeDtypeStruct((B, F2, n_frames_p), jnp.float32),
        grid_spec=pltpu.PrefetchScalarGridSpec(
            num_scalar_prefetch=0,
            grid=grid,
            in_specs=in_specs,
            out_specs=out_specs),
        compiler_params=pltpu.CompilerParams(
            dimension_semantics=semantics,
            vmem_limit_bytes=int(vmem_limit_bytes)),
    )(dftT, frames_t)


# ------------------------------------------------------------------------------- tiling
def _vmem_budget_bytes():
    """~80% of per-core VMEM capacity; falls back to the smallest generation (v7x)."""
    cap = 64 * 1024 * 1024
    try:
        info_cap = int(pltpu.get_tpu_info().vmem_capacity_bytes)
        if info_cap >= 16 * 1024 * 1024:
            cap = info_cap
    except Exception:
        pass
    return int(cap * 0.8)


def _choose_tiling(n_fft, f2, n_frames, in_itemsize, budget):
    """Pick (tf, tk, n_frames_p, vmem_limit_bytes) from the per-generation VMEM budget."""
    slack = 2 * 1024 * 1024
    n_frames_p = _round_up(n_frames, 128)   # lane-dense output stores

    def vmem_need(tk, tf):
        # Double-buffered dft / frames / out blocks (out is always f32).
        return 2 * (f2 * tk * in_itemsize + tk * tf * in_itemsize + f2 * tf * 4) + slack

    tf_candidates = [c for c in (512, 384, 256, 128) if n_frames_p % c == 0]

    # Prefer a fully-resident DFT matrix (tk = n_fft, single HBM read for the whole
    # kernel): shrink the frame tile before giving up on residency.
    for tf in tf_candidates:
        need = vmem_need(n_fft, tf)
        if need <= budget:
            return tf, n_fft, n_frames_p, min(max(need, 32 * 1024 * 1024), budget)

    # Fall back to K-tiling for very large n_fft: halve tk while it stays a
    # 128-multiple divisor of n_fft and the blocks still blow the budget.
    # TODO(synk): single-buffer (pl.Buffered(1)) the constant DFT block to extend the
    # resident path to n_fft~4096 on 128 MiB parts without doubling its footprint.
    tf = tf_candidates[-1]
    tk = n_fft
    while vmem_need(tk, tf) > budget and tk % 2 == 0 and (tk // 2) % 128 == 0:
        tk //= 2
    return tf, tk, n_frames_p, min(max(vmem_need(tk, tf), 32 * 1024 * 1024), budget)


# ------------------------------------------------------------------------------ framing
def _frame_time_major(xp, n_fft, hop, n_frames_out):
    """frames_t[b, n, t] = xp[b, t*hop + n], shape (B, n_fft, n_frames_out).

    Built from Q = ceil(n_fft/hop) shifted chunk slices + one minor-dim transpose
    (no general gather).  Frames past the valid range read zero padding and are
    discarded by the caller.
    """
    B, Tp = xp.shape
    Q = -(-n_fft // hop)
    M = n_frames_out + Q - 1
    need = M * hop
    if need > Tp:
        xp = jnp.pad(xp, ((0, 0), (0, need - Tp)))
    elif need < Tp:
        xp = xp[:, :need]
    xc = xp.reshape(B, M, hop)                               # xc[b, m, r] = xp[b, m*hop + r]
    stk = jnp.stack([xc[:, q:q + n_frames_out, :] for q in range(Q)], axis=1)
    frames_t = jnp.transpose(stk, (0, 1, 3, 2)).reshape(B, Q * hop, n_frames_out)
    return frames_t[:, :n_fft, :]
    # TODO(synk): in-kernel framing (DMA overlapping signal chunks, hop-strided slices
    # in VMEM) would remove this HBM intermediate entirely.


# -------------------------------------------------------------------------------- module
class Spec:
    """JAX/Pallas port of the PyTorch Spec module (forward / STFT path)."""

    def __init__(self, n_fft, hop_length, compute_dtype=jnp.float32):
        self.n_fft = n_fft
        self.hop_length = hop_length
        self.n_freq = n_fft // 2 + 1
        self.compute_dtype = jnp.dtype(compute_dtype)

        # Fused output row layout: Re bins at row 0, Im bins at the next multiple of 8
        # (sublane-aligned slice); the whole [Re ; Im] block padded once to a multiple
        # of 128 for lane-dense stores and full MXU column tiles.
        self._im_off = _round_up(self.n_freq, 8)
        self.f2 = _round_up(2 * self._im_off, 128)

        n = np.arange(n_fft)
        f = np.arange(self.n_freq)
        # torch.hann_window default is periodic: 0.5*(1 - cos(2*pi*n/N)), N = n_fft.
        win = 0.5 * (1.0 - np.cos(2.0 * np.pi * n / n_fft))
        # Integer (n*f) mod n_fft before scaling keeps angles exact for large n_fft.
        ang = 2.0 * np.pi * ((n[:, None] * f[None, :]) % n_fft) / n_fft
        block = np.zeros((n_fft, self.f2), dtype=np.float64)
        block[:, :self.n_freq] = win[:, None] * np.cos(ang)                  # Re
        block[:, self._im_off:self._im_off + self.n_freq] = (
            -(win[:, None] * np.sin(ang)))                                   # -i folded in
        # (F2, n_fft): rows = [Re-bins ; Im-bins], Hann window folded in.
        self.dftT = jnp.asarray(block.T, dtype=self.compute_dtype)

    def __call__(self, x, inverse=False):
        if inverse:
            # TODO(synk): inverse=True (istft / overlap-add) path not implemented as a Pallas kernel.
            raise NotImplementedError("inverse=True (istft) not implemented")

        shape = x.shape
        T = shape[-1]
        pad = self.n_fft // 2
        if T <= pad:
            raise ValueError("signal length must exceed n_fft//2 for reflect padding")

        x2 = x.reshape(-1, T).astype(jnp.float32)             # (B, T)
        # torch.stft defaults: center=True, pad_mode='reflect', onesided=True,
        # win_length=n_fft, normalized=False.
        xp = jnp.pad(x2, ((0, 0), (pad, pad)), mode="reflect")
        n_frames = 1 + T // self.hop_length

        budget = _vmem_budget_bytes()
        tf, tk, n_frames_p, vmem_limit = _choose_tiling(
            self.n_fft, self.f2, n_frames, self.compute_dtype.itemsize, budget)

        # Frames directly in (B, n_fft, n_frames_p) layout so the kernel writes the
        # final (freq, frames) orientation -> no post-kernel complex transpose.
        frames_t = _frame_time_major(xp, self.n_fft, self.hop_length, n_frames_p)
        frames_t = frames_t.astype(self.compute_dtype)

        out = stft_pallas(self.dftT, frames_t, tf=tf, tk=tk,
                          vmem_limit_bytes=vmem_limit)        # (B, F2, n_frames_p) f32

        re = out[:, :self.n_freq, :n_frames]
        im = out[:, self._im_off:self._im_off + self.n_freq, :n_frames]
        spec = re + 1j * im                                   # complex64, (B, n_freq, n_frames)
        return spec.reshape(*shape[:-1], self.n_freq, n_frames)


# ------------------------------------------------------------------------------ reference
def _reference_stft(x, n_fft, hop):
    """Pure-jnp reference (same math, no Pallas) for a correctness check."""
    shape = x.shape
    x2 = x.reshape(-1, shape[-1]).astype(jnp.float32)
    pad = n_fft // 2
    xp = jnp.pad(x2, ((0, 0), (pad, pad)), mode="reflect")
    n_frames = 1 + shape[-1] // hop

    n = np.arange(n_fft)
    f = np.arange(n_fft // 2 + 1)
    ang = 2.0 * np.pi * ((n[:, None] * f[None, :]) % n_fft) / n_fft
    window = jnp.asarray((0.5 * (1.0 - np.cos(2.0 * np.pi * n / n_fft))
                          ).astype(np.float32))
    cos_mat = jnp.asarray(np.cos(ang).astype(np.float32))
    sin_mat = jnp.asarray(np.sin(ang).astype(np.float32))

    idx = jnp.arange(n_frames)[:, None] * hop + jnp.arange(n_fft)[None, :]
    frames = xp[:, idx] * window[None, None, :]
    re = jnp.einsum("btn,nf->btf", frames, cos_mat)
    im = -jnp.einsum("btn,nf->btf", frames, sin_mat)
    spec = jnp.transpose(re + 1j * im, (0, 2, 1))
    return spec.reshape(*shape[:-1], n_fft // 2 + 1, n_frames)


if __name__ == "__main__":
    n_fft, hop = 16, 4
    key = jax.random.PRNGKey(0)
    x = jax.random.normal(key, (2, 4, 64), dtype=jnp.float32)

    spec_mod = Spec(n_fft, hop)
    out = spec_mod(x)
    out = jax.block_until_ready(out)

    ref = _reference_stft(x, n_fft, hop)
    n_frames = 1 + 64 // hop
    assert out.shape == (2, 4, n_fft // 2 + 1, n_frames), out.shape
    assert out.dtype == jnp.complex64, out.dtype
    assert jnp.allclose(out, ref, atol=5e-4, rtol=5e-4), \
        float(jnp.max(jnp.abs(out - ref)))

    print("KERNEL_OK")
</pallas_src>

<mosaic_0001>
module attributes {stable_mosaic.version = 11 : i64} {
  func.func @_stft_kernel_single(%arg0: i32, %arg1: i32, %arg2: memref<128x16xf32, #tpu.memory_space<vmem>>, %arg3: memref<1x16x128xf32, #tpu.memory_space<vmem>>, %arg4: memref<1x128x128xf32, #tpu.memory_space<vmem>>) attributes {dimension_semantics = [#tpu.dimension_semantics<parallel>, #tpu.dimension_semantics<parallel>], iteration_bounds = array<i64: 8, 1>, scalar_prefetch = 0 : i64, scratch_operands = 0 : i64, tpu.core_type = #tpu.core_type<tc>, window_params = [{pipeline_mode = #tpu.pipeline_mode<synchronous>, transform_indices = @transform_0, window_bounds = array<i64: 128, 16>}, {transform_indices = @transform_1, window_bounds = array<i64: 1, 16, 128>}, {transform_indices = @transform_2, window_bounds = array<i64: 1, 128, 128>}]} {
    %c0 = arith.constant 0 : index
    %c0_0 = arith.constant 0 : index
    %0 = vector.load %arg2[%c0, %c0_0] : memref<128x16xf32, #tpu.memory_space<vmem>>, vector<128x16xf32>
    %c0_1 = arith.constant 0 : index
    %c0_2 = arith.constant 0 : index
    %c0_3 = arith.constant 0 : index
    %1 = vector.load %arg3[%c0_1, %c0_2, %c0_3] : memref<1x16x128xf32, #tpu.memory_space<vmem>>, vector<1x16x128xf32>
    %2 = vector.shape_cast %1 : vector<1x16x128xf32> to vector<16x128xf32>
    %cst = arith.constant dense<0.000000e+00> : vector<128x128xf32>
    %3 = tpu.matmul %0, %2, %cst {dimension_numbers = #tpu.dot_dimension_numbers<[1], [0], [0], [1], [0, 0, 1, 1], [], []>} : vector<128x16xf32>, vector<16x128xf32>, vector<128x128xf32> -> vector<128x128xf32>
    %c0_4 = arith.constant 0 : index
    %c0_5 = arith.constant 0 : index
    %c0_6 = arith.constant 0 : index
    %4 = vector.load %arg4[%c0_4, %c0_5, %c0_6] : memref<1x128x128xf32, #tpu.memory_space<vmem>>, vector<1x128x128xf32>
    %5 = vector.shape_cast %4 : vector<1x128x128xf32> to vector<128x128xf32>
    %6 = vector.shape_cast %3 : vector<128x128xf32> to vector<1x128x128xf32>
    tpu.vector_store %arg4[%c0_4, %c0_5, %c0_6], %6 {strides = array<i32>} : memref<1x128x128xf32, #tpu.memory_space<vmem>>, vector<1x128x128xf32>,
    return
  }
  func.func @transform_0(%arg0: i32, %arg1: i32) -> (i32, i32) {
    %c0_i32 = arith.constant 0 : i32
    %c0_i32_0 = arith.constant 0 : i32
    %c0_i32_1 = arith.constant 0 : i32
    return %c0_i32, %c0_i32_0 : i32, i32
  }
  func.func @transform_1(%arg0: i32, %arg1: i32) -> (i32, i32, i32) {
    %c0_i32 = arith.constant 0 : i32
    %c0_i32_0 = arith.constant 0 : i32
    return %arg0, %c0_i32, %arg1 : i32, i32, i32
  }
  func.func @transform_2(%arg0: i32, %arg1: i32) -> (i32, i32, i32) {
    %c0_i32 = arith.constant 0 : i32
    %c0_i32_0 = arith.constant 0 : i32
    return %arg0, %c0_i32, %arg1 : i32, i32, i32
  }
}

</mosaic_0001>

<bundles_post_ra>
// kernel: tpu_custom_call.1
= control target key start
LH: loop header
LB: loop body
LE: loop exit
PB: predicated region body
PF: predicated region fallthrough
CT: control target
= control target key end

     0   :  { %7 = vsyncpa [#allocation3], 0  ;;  %s923_s0 = inlined_call_operand.vmem [shape: f32[128,16], index: 0, kind: input, shape index: {}]   ;;  %s924_s1 = inlined_call_operand.vmem [shape: f32[8,16,128], index: 1, kind: input, shape index: {}]   ;;  %s925_s2 = inlined_call_operand.hbm [shape: f32[8,128,128], index: 2, kind: output, shape index: {}]  }
   0x1   :  { %9 = vsyncpa [#allocation3 + $0x1], 0  ;;  %s722_s9 = smov 0   ;;  %s724_s10 = smov 0  }
   0x2   :  { %s726_s11 = smov 0   ;;  %s728_s12 = smov 0  }
   0x3   :  { %s730_s13 = smov 0   ;;  %s732_s14 = smov 0  }
   0x4 LB: > { %s488_s15 = sadd.s32 4294967295, %s702_s14   ;;  %s489_s16 = sadd.s32 4294967294, %s702_s14   ;;  %s702_s14 = sphi %s732_s14, %s15_s14   ;;  %s698_s13 = sphi %s730_s13, %s932_s13   ;;  %s694_s12 = sphi %s728_s12, %s931_s12   ;;  %s690_s11 = sphi %s726_s11, %s930_s11   ;;  %s686_s10 = sphi %s724_s10, %s929_s10   ;;  %s682_s9 = sphi %s722_s9, %s928_s9  }
   0x5   : > { %s27_s17 = sadd.s32 1, %s698_s13  ;;  %s85_s18 = sadd.s32 1, %s690_s11 }
   0x6   : > { %p29_p0 = scmp.ge.s32.totalorder %s27_s17, 8  ;;  %p95_p1 = scmp.ne.s32.totalorder %s690_s11, %s686_s10 }
   0x7   : > { %p96_p2 = scmp.eq.s32.totalorder %s488_s15, 7  ;;  %p101_p3 = scmp.ne.s32.totalorder %s686_s10, %s682_s9 }
   0x8   : > { %s934_s17 = smov (%p29_p0, %s27_s17), 0  ;;  %p102_p5 = scmp.eq.s32.totalorder %s489_s16, 7 }
   0x9   : > { %p762_p4 = por %p96_p2, %p95_p1  ;;  %s80_s20 = ssub.s32 %s698_s13, %s934_s17 }
   0xa   : > { %p492_p6 = scmp.ge.s32.totalorder %s702_s14, 1  ;;  %p83_p7 = scmp.eq.s32.totalorder %s80_s20, 0 }
   0xb   : > { %p769_p8 = por %p102_p5, %p101_p3  ;;  %p134_p9 = scmp.lt.s32.totalorder %s702_s14, 9 }
   0xc   : > { %s775_s22 = scalar_select %p83_p7, %s690_s11, %s85_s18  }
   0xd   : > { %p135_p10 = pnand %p492_p6, %p134_p9 }
   0xe   : > { %p159_p11 = scmp.lt.s32.totalorder (!%p135_p10), %s694_s12, 7  ;;  %s156_s24 = sand.u32 (!%p135_p10), 1, %s686_s10  }
   0xf   : > { %138 = sbr.rel (%p135_p10) target bundleno = 250 (0xfa), region = 28  ;;  %s493_s25 = sshll.u32 (!%p135_p10), %s156_s24, 7 }
  0x10   : > { %s849_s26 = scalar_lea.vmem (!%p135_p10), [#allocation2], %s493_s25  ;;  %s704_s5 = smov (!%p135_p10), [#allocation2]  }
  0x11   : > { %s630_s6 = sshll.u32 (!%p135_p10), %s704_s5, 4  ;;  %s631_s6 = int_to_ptr.vmem [resolvable:$false] %s630_s6 }
  0x12   : > { %s632_s7 = scalar_lea.vmem (!%p135_p10), %s631_s6, 4096 }
  0x14   : > { %v167_v0 = vld [vmem:[%s923_s0] sm:$0xff]  ;;  %vm185_vm0 = vcmask 130048   ;;  %s160_s27 = scalar_select %p159_p11, %s694_s12, 7  ;;  %v168_v4 = vld [vmem:[%s923_s0 + $0x8] sm:$0xff]  ;;  %v169_v6 = vld [vmem:[%s923_s0 + $0x10] sm:$0xff] }
  0x15   : > { %v175_v1 = vld [vmem:[%s923_s0 + $0x40] sm:$0xff]  ;;  %541 = vmatprep.mubr.msk.f32.mxu0 %vm185_vm0, %v167_v0  ;;  %v176_v5 = vld [vmem:[%s923_s0 + $0x48] sm:$0xff]  ;;  %v177_v7 = vld [vmem:[%s923_s0 + $0x50] sm:$0xff] }
  0x16   : > { %553 = vmatprep.mubr.msk.f32.mxu1 %vm185_vm0, %v175_v1  ;;  %s517_s28 = sshll.u32 %s160_s27, 4  ;;  %v170_v8 = vld [vmem:[%s923_s0 + $0x18] sm:$0xff]  ;;  %v171_v10 = vld [vmem:[%s923_s0 + $0x20] sm:$0xff]  ;;  %v172_v12 = vld [vmem:[%s923_s0 + $0x28] sm:$0xff]  ;;  %s518_s27 = sshll.u32 %s694_s12, 11 }
  0x17   : > { %s166_s3 = scalar_lea.vmem %s924_s1, %s517_s28  ;;  %v178_v9 = vld [vmem:[%s923_s0 + $0x58] sm:$0xff]  ;;  %v179_v11 = vld [vmem:[%s923_s0 + $0x60] sm:$0xff]  ;;  %v180_v13 = vld [vmem:[%s923_s0 + $0x68] sm:$0xff]  ;;  %s410_s28 = sshll.u32 %s849_s26, 4  ;;  %s870_s28 = int_to_ptr.vmem [resolvable:$true] %s410_s28 }
  0x18   : > { %v184_v2 = vld [vmem:[%s166_s3 + $0x8] sm:$0xff]  ;;  %v183_v3 = vld [vmem:[%s166_s3] sm:$0xff]  ;;  %v173_v14 = vld [vmem:[%s923_s0 + $0x30] sm:$0xff]  ;;  %s868_s3 = scalar_lea.hbm %s925_s2, %s518_s27  ;;  %s878_s12 = scalar_lea.sflag [#allocation3], %s156_s24 }
  0x19   : > { %537 = vmatprep.subr.mxu0 %v184_v2  ;;  %565 = vmatprep.subr.mxu1 %v184_v2  ;;  %v181_v15 = vld [vmem:[%s923_s0 + $0x70] sm:$0xff]  ;;  %v174_v16 = vld [vmem:[%s923_s0 + $0x38] sm:$0xff]  ;;  %s626_s4 = scalar_lea.vmem %s870_s28, 2048  ;;  %p633_p1 = scmp.lt.s32.totalorder %s870_s28, %s631_s6 }
  0x1a   : > { %538 = vmatpush3.msra.mxu0 %v184_v2  ;;  %567 = vmatpush3.msra.mxu1 %v184_v2  ;;  %v182_v17 = vld [vmem:[%s923_s0 + $0x78] sm:$0xff]  ;;  %p627_p12 = scmp.ne.s32.totalorder %s870_s28, %s626_s4  ;;  %p634_p2 = scmp.lt.s32.totalorder %s632_s7, %s626_s4 }
  0x1b   : > { %539 = vmatprep.subr.mxu0 %v183_v3  ;;  %566 = vmatprep.subr.mxu1 %v183_v3 }
  0x1c   : > { %540 = vmatpush3.msra.mxu0 %v183_v3  ;;  %568 = vmatpush3.msra.mxu1 %v183_v3  ;;  %p628_p13 = pnand %p627_p12, %p762_p4  ;;  %p635_p3 = por %p634_p2, %p633_p1 }
  0x1d   : > { %542 = vmatmul.mubr.msk.f32.vlgmr.msra.gmra.mxu0 %vm185_vm0, %v168_v4  ;;  %554 = vmatmul.mubr.msk.f32.vlgmr.msra.gmra.mxu1 %vm185_vm0, %v176_v5 }
  0x1e   : > { %544 = vmatprep.mubr.msk.f32.mxu0 %vm185_vm0, %v169_v6  ;;  %556 = vmatprep.mubr.msk.f32.mxu1 %vm185_vm0, %v177_v7  ;;  %p629_p0 = pneg %p628_p13 }
  0x20   : > { %p636_p5 = pnand %p635_p3, %p629_p0 }
  0x21   : > { %545 = vmatmul.mubr.msk.f32.gmra.mxu0 %vm185_vm0, %v170_v8  ;;  %557 = vmatmul.mubr.msk.f32.gmra.mxu1 %vm185_vm0, %v178_v9 }
  0x22   : > { %547 = vmatprep.mubr.msk.f32.mxu0 %vm185_vm0, %v171_v10  ;;  %559 = vmatprep.mubr.msk.f32.mxu1 %vm185_vm0, %v179_v11 }
  0x25   : > { %548 = vmatmul.mubr.msk.f32.gmra.mxu0 %vm185_vm0, %v172_v12  ;;  %560 = vmatmul.mubr.msk.f32.gmra.mxu1 %vm185_vm0, %v180_v13 }
  0x26   : > { %550 = vmatprep.mubr.msk.f32.mxu0 %vm185_vm0, %v173_v14  ;;  %562 = vmatprep.mubr.msk.f32.mxu1 %vm185_vm0, %v181_v15 }
  0x29   : > { %551 = vmatmul.mubr.msk.f32.gmra.mxu0 %vm185_vm0, %v174_v16  ;;  %563 = vmatmul.mubr.msk.f32.gmra.mxu1 %vm185_vm0, %v182_v17 }
  0xdd   : > { %v543_v18 = vpop.f32.mrf.mxu0  ;;  %v555_v19 = vpop.f32.mrf.mxu1 }
  0xde   : > { %380 = vst [vmem:[%s849_s26 + $0x8] sm:$0xff] %v543_v18  ;;  %388 = vst [vmem:[%s849_s26 + $0x48] sm:$0xff] %v555_v19 }
  0xdf   : > { %v300_v20 = vpop.f32.mrf.mxu0  ;;  %v340_v21 = vpop.f32.mrf.mxu1 }
  0xe0   : > { %379 = vst [vmem:[%s849_s26] sm:$0xff] %v300_v20  ;;  %387 = vst [vmem:[%s849_s26 + $0x40] sm:$0xff] %v340_v21 }
  0xe1   : > { %v546_v22 = vpop.f32.mrf.mxu0  ;;  %v558_v23 = vpop.f32.mrf.mxu1 }
  0xe2   : > { %382 = vst [vmem:[%s849_s26 + $0x18] sm:$0xff] %v546_v22  ;;  %390 = vst [vmem:[%s849_s26 + $0x58] sm:$0xff] %v558_v23 }
  0xe3   : > { %v310_v24 = vpop.f32.mrf.mxu0  ;;  %v350_v25 = vpop.f32.mrf.mxu1 }
  0xe4   : > { %381 = vst [vmem:[%s849_s26 + $0x10] sm:$0xff] %v310_v24  ;;  %389 = vst [vmem:[%s849_s26 + $0x50] sm:$0xff] %v350_v25 }
  0xe5   : > { %v549_v26 = vpop.f32.mrf.mxu0  ;;  %v561_v27 = vpop.f32.mrf.mxu1 }
  0xe6   : > { %384 = vst [vmem:[%s849_s26 + $0x28] sm:$0xff] %v549_v26  ;;  %392 = vst [vmem:[%s849_s26 + $0x68] sm:$0xff] %v561_v27 }
  0xe7   : > { %v320_v28 = vpop.f32.mrf.mxu0  ;;  %v360_v29 = vpop.f32.mrf.mxu1 }
  0xe8   : > { %383 = vst [vmem:[%s849_s26 + $0x20] sm:$0xff] %v320_v28  ;;  %391 = vst [vmem:[%s849_s26 + $0x60] sm:$0xff] %v360_v29 }
  0xe9   : > { %v552_v30 = vpop.f32.mrf.mxu0  ;;  %v564_v31 = vpop.f32.mrf.mxu1 }
  0xea   : > { %386 = vst [vmem:[%s849_s26 + $0x38] sm:$0xff] %v552_v30  ;;  %394 = vst [vmem:[%s849_s26 + $0x78] sm:$0xff] %v564_v31 }
  0xeb   : > { %v330_v32 = vpop.f32.mrf.mxu0  ;;  %v370_v33 = vpop.f32.mrf.mxu1 }
  0xec   : > { %385 = vst [vmem:[%s849_s26 + $0x30] sm:$0xff] %v330_v32  ;;  %393 = vst [vmem:[%s849_s26 + $0x70] sm:$0xff] %v370_v33 }
  0xed   : > { %639 = shalt.err (!%p636_p5)
}
  0xee   : > { %s640_s8 = scalar_lea.hbm %s868_s3, 2048  ;;  %s644_s18 = scalar_lea.hbm %s925_s2, 16384 }
  0xef   : > { %p641_p6 = scmp.ne.s32.totalorder %s868_s3, %s640_s8  ;;  %p645_p10 = scmp.lt.s32.totalorder %s868_s3, %s925_s2 }
  0xf0   : > { %p646_p11 = scmp.lt.s32.totalorder %s644_s18, %s640_s8 }
  0xf1   : > { %p642_p7 = pnand %p641_p6, %p762_p4 }
  0xf2   : > { %p647_p12 = por %p646_p11, %p645_p10 }
  0xf3   : > { %p643_p9 = pneg %p642_p7 }
  0xf5   : > { %p648_p13 = pnand %p647_p12, %p643_p9 }
  0xf7   : > { %651 = shalt.err (!%p648_p13)
}
  0xf8   : > { %s705_s24 = smov 128   ;;  %s706_s25 = smov 8  }
  0xf9   : > { %569 = dma.vmem_to_hbm [thread:$0]  (%p762_p4), %s870_s28, 2048, %s868_s3, %s878_s12, %s705_s24, %s705_s24, %s706_s25  }
  0xfa PF: > { %p575_p0 = scmp.ge.s32.totalorder %s702_s14, 2  ;;  %s425_s26 = sand.u32 1, %s682_s9  }
  0xfb   : > { %s426_s27 = scalar_lea.sflag [#allocation3], %s425_s26 }
  0xfc   : > { %p572_p1 = pnand %p575_p0, %p769_p8 }
  0xfe   : > { %p573_p2 = pneg %p572_p1 }
 0x100   : > { %677 = dma.done.wait (%p573_p2), %s426_s27, 2048  }
 0x101   : > { %679 = vsyncadd (%p573_p2), %s426_s27, 4294965248  ;;  %s15_s14 = sadd.s32 1, %s702_s14   ;;  %s928_s9 = smov %s686_s10 }
 0x102   : > { %p12_p3 = scmp.ge.s32.totalorder %s15_s14, 10   ;;  %s929_s10 = smov %s690_s11 }
 0x103   : > { %s930_s11 = smov %s775_s22  ;;  %s931_s12 = smov %s698_s13 }
 0x104   : > { %s932_s13 = smov %s934_s17  ;;  %14 = sbr.rel (!%p12_p3) target bundleno = 4 (0x4), region = 63 }
 0x109   :  { %431 = vsyncpa [#allocation3], 1 }
 0x10a   :  { %433 = vsyncpa [#allocation3 + $0x1], 1 }

</bundles_post_ra>
